<compile_context>
chip_gen: v7x
topology: tpu7x:2x2x1
jax: 0.10.0
libtpu: 0.0.40
codegen_flags: <defaults>
</compile_context>

<pallas_src>
import functools

import jax
import jax.numpy as jnp
from jax.experimental import pallas as pl
from jax.experimental.pallas import tpu as pltpu


def _round_up(x, m):
    return ((x + m - 1) // m) * m


def _cdiv(a, b):
    return (a + b - 1) // b


def vae_kernel(x_ref, eps_ref,
               w1_ref, b1_ref,
               w2_ref, b2_ref,
               w3_ref, b3_ref,
               w4_ref, b4_ref,
               recon_ref, mulv_ref, *, latent_dim):
    # --- encode ---
    # x tile arrives in f32 (no wrapper-side cast / extra HBM pass); cast to
    # bf16 in-registers right before the MXU dot, accumulate in f32.
    x_bf16 = x_ref[...].astype(jnp.bfloat16)
    h1 = jnp.dot(x_bf16, w1_ref[...],
                 preferred_element_type=jnp.float32) + b1_ref[...]
    h1 = jnp.maximum(h1, 0.0)                                   # relu(fc1(x))

    # fc2 as ONE lane-dense matmul: columns are [W_mu | W_logvar | zero-pad]
    # (padded to a multiple of 128 lanes in the wrapper) -> unmasked stores.
    mulv = jnp.dot(h1.astype(jnp.bfloat16), w2_ref[...],
                   preferred_element_type=jnp.float32) + b2_ref[...]
    mu = mulv[:, :latent_dim]
    logvar = mulv[:, latent_dim:2 * latent_dim]

    # --- reparameterize: z = mu + eps * exp(0.5 * logvar)  (all f32) ---
    # TODO(synk): eps could be generated in-kernel via pltpu.prng_seed +
    # stateful_normal to drop one HBM stream; kept as an input for
    # reproducibility against the host-side reference.
    std = jnp.exp(0.5 * logvar)
    z = mu + eps_ref[...] * std

    # --- decode ---
    h3 = jnp.dot(z.astype(jnp.bfloat16), w3_ref[...],
                 preferred_element_type=jnp.float32) + b3_ref[...]
    h3 = jnp.maximum(h3, 0.0)                                   # relu(fc3(z))
    recon = jnp.dot(h3.astype(jnp.bfloat16), w4_ref[...],
                    preferred_element_type=jnp.float32) + b4_ref[...]
    recon = jnp.maximum(recon, 0.0)                             # relu(fc4(h3))

    recon_ref[...] = recon.astype(recon_ref.dtype)
    mulv_ref[...] = mulv                                        # split/trim in wrapper


def vae_forward(x, eps, params, *, recon_dtype=jnp.float32):
    """x: (..., n_bins) float; eps: (B, latent_dim) standard-normal draws.

    Returns (recon, mu, logvar) exactly like VAE.forward (matmuls in bf16 with
    f32 accumulation, elementwise math in f32).
    """
    n_bins, n_units = params["w1"].shape
    latent_dim = params["w3"].shape[0]

    x_flat = x.reshape(-1, n_bins).astype(jnp.float32)          # x.view(-1, n_bins)
    B = x_flat.shape[0]

    # Batch tile: up to 2048 rows (amortizes per-grid-step overhead), multiple
    # of 16 (bf16 sublane packing), and chosen so the grid has >=2 roughly
    # equal steps whenever B allows it (keeps both v7x TensorCores busy via the
    # "parallel" axis) without inflating padding for large B.
    n_tiles = max(2, _cdiv(B, 2048))
    TB = max(16, min(2048, _round_up(_cdiv(B, n_tiles), 16)))
    B_pad = _round_up(B, TB)
    if B_pad != B:
        x_flat = jnp.pad(x_flat, ((0, B_pad - B), (0, 0)))
        eps = jnp.pad(eps, ((0, B_pad - B), (0, 0)))
    eps_f32 = eps.astype(jnp.float32)

    # bf16 matmul weights, f32 biases. fc2 weight/bias zero-padded to a
    # 128-lane multiple so the fused mu/logvar output slab is lane-dense.
    MV = _round_up(2 * latent_dim, 128)
    w1 = params["w1"].astype(jnp.bfloat16)
    w2 = params["w2"].astype(jnp.bfloat16)
    w3 = params["w3"].astype(jnp.bfloat16)
    w4 = params["w4"].astype(jnp.bfloat16)
    b1, b2, b3, b4 = (params[k].astype(jnp.float32)
                      for k in ("b1", "b2", "b3", "b4"))
    if MV != 2 * latent_dim:
        w2 = jnp.pad(w2, ((0, 0), (0, MV - 2 * latent_dim)))
        b2 = jnp.pad(b2, ((0, 0), (0, MV - 2 * latent_dim)))

    inputs = (x_flat, eps_f32, w1, b1, w2, b2, w3, b3, w4, b4)

    grid = (B_pad // TB,)

    def row_spec(feat):
        return pl.BlockSpec((TB, feat), lambda i: (i, 0))

    def pinned_spec(arr):
        # Constant index_map -> DMA'd once, VMEM-resident across the grid.
        return pl.BlockSpec(arr.shape, lambda i: (0, 0))

    in_specs = [
        row_spec(n_bins),                                       # x (f32)
        row_spec(latent_dim),                                   # eps (f32)
        pinned_spec(w1), pinned_spec(b1),
        pinned_spec(w2), pinned_spec(b2),
        pinned_spec(w3), pinned_spec(b3),
        pinned_spec(w4), pinned_spec(b4),
    ]
    out_specs = (
        row_spec(n_bins),                                       # recon
        row_spec(MV),                                           # [mu | logvar | pad]
    )
    out_shape = (
        jax.ShapeDtypeStruct((B_pad, n_bins), recon_dtype),
        jax.ShapeDtypeStruct((B_pad, MV), jnp.float32),
    )

    matmul_flops = 2 * B_pad * (n_bins * n_units +
                                n_units * MV +
                                latent_dim * n_units +
                                n_units * n_bins)
    bytes_accessed = (
        x_flat.size * 4 + eps_f32.size * 4 +
        sum(w.size * 2 for w in (w1, w2, w3, w4)) +
        sum(b.size * 4 for b in (b1, b2, b3, b4)) +
        B_pad * n_bins * jnp.dtype(recon_dtype).itemsize +
        B_pad * MV * 4
    )
    cost = pl.CostEstimate(flops=matmul_flops,
                           transcendentals=B_pad * latent_dim,
                           bytes_accessed=bytes_accessed)

    recon, mulv = pl.pallas_call(
        functools.partial(vae_kernel, latent_dim=latent_dim),
        out_shape=out_shape,
        grid=grid,
        in_specs=in_specs,
        out_specs=out_specs,
        compiler_params=pltpu.CompilerParams(
            dimension_semantics=("parallel",),                  # 2 TCs on v7x
            vmem_limit_bytes=48 * 1024 * 1024,                  # safe on v7x's 64 MiB
        ),
        cost_estimate=cost,
    )(*inputs)

    recon = recon[:B]
    mu = mulv[:B, :latent_dim]
    logvar = mulv[:B, latent_dim:2 * latent_dim]
    return recon, mu, logvar


def init_params(key, n_bins, n_units, latent_dim):
    """PyTorch-Linear-style init (uniform +-1/sqrt(fan_in)), weights
    pre-transposed to (in, out); fc2 is the single fused mu/logvar layer
    (columns ordered [W_mu | W_logvar], matching the in-kernel split)."""
    ks = jax.random.split(key, 8)

    def linear(kw, kb, fan_in, fan_out):
        bound = 1.0 / jnp.sqrt(fan_in)
        w = jax.random.uniform(kw, (fan_in, fan_out), jnp.float32, -bound, bound)
        b = jax.random.uniform(kb, (1, fan_out), jnp.float32, -bound, bound)
        return w, b

    w1, b1 = linear(ks[0], ks[1], n_bins, n_units)
    w2, b2 = linear(ks[2], ks[3], n_units, 2 * latent_dim)
    w3, b3 = linear(ks[4], ks[5], latent_dim, n_units)
    w4, b4 = linear(ks[6], ks[7], n_units, n_bins)

    return {"w1": w1, "b1": b1, "w2": w2, "b2": b2,
            "w3": w3, "b3": b3, "w4": w4, "b4": b4}


if __name__ == "__main__":
    n_bins, n_units, latent_dim = 128, 64, 32
    batch, time = 2, 8                                          # x.view(-1, n_bins) -> B = 16

    key = jax.random.PRNGKey(0)
    k_x, k_eps, k_p = jax.random.split(key, 3)

    x = jax.random.normal(k_x, (batch, time, n_bins), jnp.float32)
    eps = jax.random.normal(k_eps, (batch * time, latent_dim), jnp.float32)
    params = init_params(k_p, n_bins, n_units, latent_dim)

    recon, mu, logvar = vae_forward(x, eps, params)
    jax.block_until_ready((recon, mu, logvar))

    # Pure-JAX reference with identical bf16-matmul / f32-elementwise recipe.
    def mm(a, w):
        return jnp.dot(a.astype(jnp.bfloat16), w.astype(jnp.bfloat16),
                       preferred_element_type=jnp.float32)

    x_flat = x.reshape(-1, n_bins)
    h1 = jnp.maximum(mm(x_flat, params["w1"]) + params["b1"], 0.0)
    mulv_ref = mm(h1, params["w2"]) + params["b2"]
    mu_ref = mulv_ref[:, :latent_dim]
    lv_ref = mulv_ref[:, latent_dim:]
    z_ref = mu_ref + eps * jnp.exp(0.5 * lv_ref)
    h3 = jnp.maximum(mm(z_ref, params["w3"]) + params["b3"], 0.0)
    rec_ref = jnp.maximum(mm(h3, params["w4"]) + params["b4"], 0.0)

    assert recon.shape == (batch * time, n_bins)
    assert mu.shape == (batch * time, latent_dim)
    assert logvar.shape == (batch * time, latent_dim)
    assert jnp.allclose(recon, rec_ref, atol=2e-2), float(jnp.abs(recon - rec_ref).max())
    assert jnp.allclose(mu, mu_ref, atol=2e-2), float(jnp.abs(mu - mu_ref).max())
    assert jnp.allclose(logvar, lv_ref, atol=2e-2), float(jnp.abs(logvar - lv_ref).max())

    print("KERNEL_OK")
</pallas_src>

<mosaic_0001>
module attributes {stable_mosaic.version = 11 : i64} {
  func.func @vae_kernel(%arg0: i32, %arg1: memref<16x128xf32, #tpu.memory_space<vmem>>, %arg2: memref<16x32xf32, #tpu.memory_space<vmem>>, %arg3: memref<128x64xbf16, #tpu.memory_space<vmem>>, %arg4: memref<1x64xf32, #tpu.memory_space<vmem>>, %arg5: memref<64x128xbf16, #tpu.memory_space<vmem>>, %arg6: memref<1x128xf32, #tpu.memory_space<vmem>>, %arg7: memref<32x64xbf16, #tpu.memory_space<vmem>>, %arg8: memref<1x64xf32, #tpu.memory_space<vmem>>, %arg9: memref<64x128xbf16, #tpu.memory_space<vmem>>, %arg10: memref<1x128xf32, #tpu.memory_space<vmem>>, %arg11: memref<16x128xf32, #tpu.memory_space<vmem>>, %arg12: memref<16x128xf32, #tpu.memory_space<vmem>>) attributes {dimension_semantics = [#tpu.dimension_semantics<parallel>], iteration_bounds = array<i64: 1>, scalar_prefetch = 0 : i64, scratch_operands = 0 : i64, tpu.core_type = #tpu.core_type<tc>, window_params = [{transform_indices = @transform_0, window_bounds = array<i64: 16, 128>}, {transform_indices = @transform_1, window_bounds = array<i64: 16, 32>}, {pipeline_mode = #tpu.pipeline_mode<synchronous>, transform_indices = @transform_2, window_bounds = array<i64: 128, 64>}, {pipeline_mode = #tpu.pipeline_mode<synchronous>, transform_indices = @transform_3, window_bounds = array<i64: 1, 64>}, {pipeline_mode = #tpu.pipeline_mode<synchronous>, transform_indices = @transform_4, window_bounds = array<i64: 64, 128>}, {pipeline_mode = #tpu.pipeline_mode<synchronous>, transform_indices = @transform_5, window_bounds = array<i64: 1, 128>}, {pipeline_mode = #tpu.pipeline_mode<synchronous>, transform_indices = @transform_6, window_bounds = array<i64: 32, 64>}, {pipeline_mode = #tpu.pipeline_mode<synchronous>, transform_indices = @transform_7, window_bounds = array<i64: 1, 64>}, {pipeline_mode = #tpu.pipeline_mode<synchronous>, transform_indices = @transform_8, window_bounds = array<i64: 64, 128>}, {pipeline_mode = #tpu.pipeline_mode<synchronous>, transform_indices = @transform_9, window_bounds = array<i64: 1, 128>}, {transform_indices = @transform_10, window_bounds = array<i64: 16, 128>}, {transform_indices = @transform_11, window_bounds = array<i64: 16, 128>}]} {
    %c0 = arith.constant 0 : index
    %c0_0 = arith.constant 0 : index
    %0 = vector.load %arg1[%c0, %c0_0] : memref<16x128xf32, #tpu.memory_space<vmem>>, vector<16x128xf32>
    %1 = arith.truncf %0 : vector<16x128xf32> to vector<16x128xbf16>
    %c0_1 = arith.constant 0 : index
    %c0_2 = arith.constant 0 : index
    %2 = vector.load %arg3[%c0_1, %c0_2] : memref<128x64xbf16, #tpu.memory_space<vmem>>, vector<128x64xbf16>
    %cst = arith.constant dense<0.000000e+00> : vector<16x64xf32>
    %3 = tpu.matmul %1, %2, %cst {dimension_numbers = #tpu.dot_dimension_numbers<[1], [0], [0], [1], [0, 0, 1, 1], [], []>} : vector<16x128xbf16>, vector<128x64xbf16>, vector<16x64xf32> -> vector<16x64xf32>
    %c0_3 = arith.constant 0 : index
    %c0_4 = arith.constant 0 : index
    %4 = vector.load %arg4[%c0_3, %c0_4] : memref<1x64xf32, #tpu.memory_space<vmem>>, vector<1x64xf32>
    %5 = vector.broadcast %4 : vector<1x64xf32> to vector<16x64xf32>
    %6 = arith.addf %3, %5 : vector<16x64xf32>
    %cst_5 = arith.constant 0.000000e+00 : f32
    %7 = vector.broadcast %cst_5 : f32 to vector<16x64xf32>
    %8 = arith.maximumf %6, %7 : vector<16x64xf32>
    %9 = arith.truncf %8 : vector<16x64xf32> to vector<16x64xbf16>
    %c0_6 = arith.constant 0 : index
    %c0_7 = arith.constant 0 : index
    %10 = vector.load %arg5[%c0_6, %c0_7] : memref<64x128xbf16, #tpu.memory_space<vmem>>, vector<64x128xbf16>
    %cst_8 = arith.constant dense<0.000000e+00> : vector<16x128xf32>
    %11 = tpu.matmul %9, %10, %cst_8 {dimension_numbers = #tpu.dot_dimension_numbers<[1], [0], [0], [1], [0, 0, 1, 1], [], []>} : vector<16x64xbf16>, vector<64x128xbf16>, vector<16x128xf32> -> vector<16x128xf32>
    %c0_9 = arith.constant 0 : index
    %c0_10 = arith.constant 0 : index
    %12 = vector.load %arg6[%c0_9, %c0_10] : memref<1x128xf32, #tpu.memory_space<vmem>>, vector<1x128xf32>
    %13 = vector.broadcast %12 : vector<1x128xf32> to vector<16x128xf32>
    %14 = arith.addf %11, %13 : vector<16x128xf32>
    %15 = vector.extract_strided_slice %14 {offsets = [0, 0], sizes = [16, 32], strides = [1, 1]} : vector<16x128xf32> to vector<16x32xf32>
    %16 = vector.extract_strided_slice %14 {offsets = [0, 32], sizes = [16, 32], strides = [1, 1]} : vector<16x128xf32> to vector<16x32xf32>
    %cst_11 = arith.constant 5.000000e-01 : f32
    %17 = vector.broadcast %cst_11 : f32 to vector<16x32xf32>
    %18 = arith.mulf %17, %16 : vector<16x32xf32>
    %19 = math.exp %18 : vector<16x32xf32>
    %c0_12 = arith.constant 0 : index
    %c0_13 = arith.constant 0 : index
    %20 = vector.load %arg2[%c0_12, %c0_13] : memref<16x32xf32, #tpu.memory_space<vmem>>, vector<16x32xf32>
    %21 = arith.mulf %20, %19 : vector<16x32xf32>
    %22 = arith.addf %15, %21 : vector<16x32xf32>
    %23 = arith.truncf %22 : vector<16x32xf32> to vector<16x32xbf16>
    %c0_14 = arith.constant 0 : index
    %c0_15 = arith.constant 0 : index
    %24 = vector.load %arg7[%c0_14, %c0_15] : memref<32x64xbf16, #tpu.memory_space<vmem>>, vector<32x64xbf16>
    %cst_16 = arith.constant dense<0.000000e+00> : vector<16x64xf32>
    %25 = tpu.matmul %23, %24, %cst_16 {dimension_numbers = #tpu.dot_dimension_numbers<[1], [0], [0], [1], [0, 0, 1, 1], [], []>} : vector<16x32xbf16>, vector<32x64xbf16>, vector<16x64xf32> -> vector<16x64xf32>
    %c0_17 = arith.constant 0 : index
    %c0_18 = arith.constant 0 : index
    %26 = vector.load %arg8[%c0_17, %c0_18] : memref<1x64xf32, #tpu.memory_space<vmem>>, vector<1x64xf32>
    %27 = vector.broadcast %26 : vector<1x64xf32> to vector<16x64xf32>
    %28 = arith.addf %25, %27 : vector<16x64xf32>
    %cst_19 = arith.constant 0.000000e+00 : f32
    %29 = vector.broadcast %cst_19 : f32 to vector<16x64xf32>
    %30 = arith.maximumf %28, %29 : vector<16x64xf32>
    %31 = arith.truncf %30 : vector<16x64xf32> to vector<16x64xbf16>
    %c0_20 = arith.constant 0 : index
    %c0_21 = arith.constant 0 : index
    %32 = vector.load %arg9[%c0_20, %c0_21] : memref<64x128xbf16, #tpu.memory_space<vmem>>, vector<64x128xbf16>
    %cst_22 = arith.constant dense<0.000000e+00> : vector<16x128xf32>
    %33 = tpu.matmul %31, %32, %cst_22 {dimension_numbers = #tpu.dot_dimension_numbers<[1], [0], [0], [1], [0, 0, 1, 1], [], []>} : vector<16x64xbf16>, vector<64x128xbf16>, vector<16x128xf32> -> vector<16x128xf32>
    %c0_23 = arith.constant 0 : index
    %c0_24 = arith.constant 0 : index
    %34 = vector.load %arg10[%c0_23, %c0_24] : memref<1x128xf32, #tpu.memory_space<vmem>>, vector<1x128xf32>
    %35 = vector.broadcast %34 : vector<1x128xf32> to vector<16x128xf32>
    %36 = arith.addf %33, %35 : vector<16x128xf32>
    %cst_25 = arith.constant 0.000000e+00 : f32
    %37 = vector.broadcast %cst_25 : f32 to vector<16x128xf32>
    %38 = arith.maximumf %36, %37 : vector<16x128xf32>
    %c0_26 = arith.constant 0 : index
    %c0_27 = arith.constant 0 : index
    %39 = vector.load %arg11[%c0_26, %c0_27] : memref<16x128xf32, #tpu.memory_space<vmem>>, vector<16x128xf32>
    tpu.vector_store %arg11[%c0_26, %c0_27], %38 {strides = array<i32>} : memref<16x128xf32, #tpu.memory_space<vmem>>, vector<16x128xf32>,
    %c0_28 = arith.constant 0 : index
    %c0_29 = arith.constant 0 : index
    %40 = vector.load %arg12[%c0_28, %c0_29] : memref<16x128xf32, #tpu.memory_space<vmem>>, vector<16x128xf32>
    tpu.vector_store %arg12[%c0_28, %c0_29], %14 {strides = array<i32>} : memref<16x128xf32, #tpu.memory_space<vmem>>, vector<16x128xf32>,
    return
  }
  func.func @transform_0(%arg0: i32) -> (i32, i32) {
    %c0_i32 = arith.constant 0 : i32
    %c0_i32_0 = arith.constant 0 : i32
    return %arg0, %c0_i32 : i32, i32
  }
  func.func @transform_1(%arg0: i32) -> (i32, i32) {
    %c0_i32 = arith.constant 0 : i32
    %c0_i32_0 = arith.constant 0 : i32
    return %arg0, %c0_i32 : i32, i32
  }
  func.func @transform_2(%arg0: i32) -> (i32, i32) {
    %c0_i32 = arith.constant 0 : i32
    %c0_i32_0 = arith.constant 0 : i32
    %c0_i32_1 = arith.constant 0 : i32
    return %c0_i32, %c0_i32_0 : i32, i32
  }
  func.func @transform_3(%arg0: i32) -> (i32, i32) {
    %c0_i32 = arith.constant 0 : i32
    %c0_i32_0 = arith.constant 0 : i32
    %c0_i32_1 = arith.constant 0 : i32
    return %c0_i32, %c0_i32_0 : i32, i32
  }
  func.func @transform_4(%arg0: i32) -> (i32, i32) {
    %c0_i32 = arith.constant 0 : i32
    %c0_i32_0 = arith.constant 0 : i32
    %c0_i32_1 = arith.constant 0 : i32
    return %c0_i32, %c0_i32_0 : i32, i32
  }
  func.func @transform_5(%arg0: i32) -> (i32, i32) {
    %c0_i32 = arith.constant 0 : i32
    %c0_i32_0 = arith.constant 0 : i32
    %c0_i32_1 = arith.constant 0 : i32
    return %c0_i32, %c0_i32_0 : i32, i32
  }
  func.func @transform_6(%arg0: i32) -> (i32, i32) {
    %c0_i32 = arith.constant 0 : i32
    %c0_i32_0 = arith.constant 0 : i32
    %c0_i32_1 = arith.constant 0 : i32
    return %c0_i32, %c0_i32_0 : i32, i32
  }
  func.func @transform_7(%arg0: i32) -> (i32, i32) {
    %c0_i32 = arith.constant 0 : i32
    %c0_i32_0 = arith.constant 0 : i32
    %c0_i32_1 = arith.constant 0 : i32
    return %c0_i32, %c0_i32_0 : i32, i32
  }
  func.func @transform_8(%arg0: i32) -> (i32, i32) {
    %c0_i32 = arith.constant 0 : i32
    %c0_i32_0 = arith.constant 0 : i32
    %c0_i32_1 = arith.constant 0 : i32
    return %c0_i32, %c0_i32_0 : i32, i32
  }
  func.func @transform_9(%arg0: i32) -> (i32, i32) {
    %c0_i32 = arith.constant 0 : i32
    %c0_i32_0 = arith.constant 0 : i32
    %c0_i32_1 = arith.constant 0 : i32
    return %c0_i32, %c0_i32_0 : i32, i32
  }
  func.func @transform_10(%arg0: i32) -> (i32, i32) {
    %c0_i32 = arith.constant 0 : i32
    %c0_i32_0 = arith.constant 0 : i32
    return %arg0, %c0_i32 : i32, i32
  }
  func.func @transform_11(%arg0: i32) -> (i32, i32) {
    %c0_i32 = arith.constant 0 : i32
    %c0_i32_0 = arith.constant 0 : i32
    return %arg0, %c0_i32 : i32, i32
  }
}

</mosaic_0001>

<bundles_post_ra>
// kernel: tpu_custom_call.1
= control target key start
LH: loop header
LB: loop body
LE: loop exit
PB: predicated region body
PF: predicated region fallthrough
CT: control target
= control target key end

     0   :  { %17 = vsyncpa [#allocation3], 0  ;;  %v631_v1 = vmov 0.0   ;;  %vm632_vm0 = vmmov 0   ;;  %s834_s0 = inlined_call_operand.vmem [shape: f32[16,128], index: 0, kind: input, shape index: {}]   ;;  %s835_s1 = inlined_call_operand.vmem [shape: f32[16,32], index: 1, kind: input, shape index: {}]   ;;  %s836_s2 = inlined_call_operand.vmem [shape: bf16[128,64], index: 2, kind: input, shape index: {}]   ;;  %s837_s3 = inlined_call_operand.vmem [shape: f32[1,64], index: 3, kind: input, shape index: {}]   ;;  %s838_s4 = inlined_call_operand.vmem [shape: bf16[64,128], index: 4, kind: input, shape index: {}]   ;;  %s839_s5 = inlined_call_operand.vmem [shape: f32[1,128], index: 5, kind: input, shape index: {}]   ;;  %s840_s6 = inlined_call_operand.vmem [shape: bf16[32,64], index: 6, kind: input, shape index: {}]   ;;  %s841_s7 = inlined_call_operand.vmem [shape: f32[1,64], index: 7, kind: input, shape index: {}]   ;;  %s842_s8 = inlined_call_operand.vmem [shape: bf16[64,128], index: 8, kind: input, shape index: {}]   ;;  %s843_s9 = inlined_call_operand.vmem [shape: f32[1,128], index: 9, kind: input, shape index: {}]   ;;  %s844_s10 = inlined_call_operand.hbm [shape: f32[16,128], index: 10, kind: output, shape index: {0}]   ;;  %s845_s11 = inlined_call_operand.hbm [shape: f32[16,128], index: 11, kind: output, shape index: {1}]  }
   0x1   :  { %v561_v0 = vld [vmem:[%s836_s2] sm:$0xff]   ;;  %502 = vmatprep.subr.bf16.mxu0 %v631_v1  ;;  %522 = vmatprep.subr.bf16.mxu1 %v631_v1  ;;  %v562_v2 = vld [vmem:[%s836_s2 + $0x8] sm:$0xff]   ;;  %v563_v3 = vld [vmem:[%s836_s2 + $0x10] sm:$0xff]  }
   0x2   :  { %503 = vmatpush3.bf16.msra.mxu0 %v561_v0  ;;  %518 = vmatprep.mubr.msk.bf16.mxu0 %vm632_vm0, %v631_v1  ;;  %v569_v4 = vld [vmem:[%s838_s4] sm:$0xff]   ;;  %v564_v5 = vld [vmem:[%s836_s2 + $0x18] sm:$0xff]   ;;  %v570_v6 = vld [vmem:[%s838_s4 + $0x8] sm:$0xff]  }
   0x3   :  { %504 = vmatprep.subr.bf16.mxu0 %v631_v1  ;;  %530 = vmatprep.mubr.msk.bf16.mxu1 %vm632_vm0, %v631_v1  ;;  %v565_v7 = vld [vmem:[%s836_s2 + $0x20] sm:$0xff]  }
   0x4   :  { %523 = vmatpush3.bf16.msra.mxu1 %v569_v4 }
   0x5   :  { %524 = vmatprep.subr.bf16.mxu1 %v631_v1 }
   0x6   :  { %505 = vmatpush3.bf16.msra.mxu0 %v562_v2 }
   0x7   :  { %506 = vmatprep.subr.bf16.mxu0 %v631_v1 }
   0x8   :  { %525 = vmatpush3.bf16.msra.mxu1 %v570_v6 }
   0x9   :  { %526 = vmatprep.subr.bf16.mxu1 %v631_v1 }
   0xa   :  { %507 = vmatpush3.bf16.msra.mxu0 %v563_v3 }
   0xb   :  { %508 = vmatprep.subr.bf16.mxu0 %v631_v1 }
   0xe   :  { %509 = vmatpush3.bf16.msra.mxu0 %v564_v5 }
   0xf   :  { %510 = vmatprep.subr.bf16.mxu0 %v631_v1 }
  0x10   :  { %18 = vsyncpa [#allocation5], 0  ;;  %v566_v8 = vld [vmem:[%s836_s2 + $0x28] sm:$0xff]   ;;  %v567_v9 = vld [vmem:[%s836_s2 + $0x30] sm:$0xff]   ;;  %vm197_vm1 = vcmask 523264   ;;  %s633_s29 = smov 96  }
  0x11   :  { %v568_v10 = vld [vmem:[%s836_s2 + $0x38] sm:$0xff]   ;;  %v40_v11 = vld [vmem:[%s834_s0] sm:$0xff]  ;;  %v41_v12 = vld [vmem:[%s834_s0 + $0x8] sm:$0xff]  ;;  %vm286_vm2 = vcmask 261120   ;;  %s634_s23 = smov [#allocation4]  }
  0x12   :  { %511 = vmatpush3.bf16.msra.mxu0 %v565_v7  ;;  %v42_v13 = vpack.c.bf16 %v41_v12, %v40_v11  ;;  %v571_v14 = vld [vmem:[%s838_s4 + $0x10] sm:$0xff]   ;;  %v572_v15 = vld [vmem:[%s838_s4 + $0x18] sm:$0xff]   ;;  %v455_v16 = vld [vmem:[%s837_s3] ss:$0 sm:$0xff]  ;;  %s440_s2 = sshll.u32 %s634_s23, 4  ;;  %s441_s2 = int_to_ptr.vmem [resolvable:$true] %s440_s2 }
  0x13   :  { %512 = vmatprep.subr.bf16.mxu0 %v631_v1  ;;  %527 = vmatpush3.bf16.msra.mxu1 %v571_v14  ;;  %v464_v26 = vld [vmem:[%s839_s5] ss:$0 sm:$0xff]  ;;  %v574_v38 = vld [vmem:[%s840_s6 + $0x8] sm:$0xff]   ;;  %v577_v52 = vld [vmem:[%s842_s8 + $0x10] sm:$0xff]   ;;  %p588_p1 = scmp.lt.s32.totalorder %s441_s2, %s441_s2 }
  0x14   :  { %528 = vmatprep.subr.bf16.mxu1 %v631_v1  ;;  %v573_v36 = vld [vmem:[%s840_s6] sm:$0xff]   ;;  %v249_v43 = vld [vmem:[%s835_s1 + $0x8] sm:$0xff]  ;;  %v578_v53 = vld [vmem:[%s842_s8 + $0x18] sm:$0xff]  }
  0x15   :  { %v248_v41 = vld [vmem:[%s835_s1] sm:$0xff]  ;;  %v576_v51 = vld [vmem:[%s842_s8 + $0x8] sm:$0xff]  }
  0x16   :  { %513 = vmatpush3.bf16.msra.mxu0 %v566_v8  ;;  %v575_v49 = vld [vmem:[%s842_s8] sm:$0xff]   ;;  %s583_s8 = scalar_lea.vmem %s441_s2, 256 }
  0x17   :  { %514 = vmatprep.subr.bf16.mxu0 %v631_v1  ;;  %529 = vmatpush3.bf16.msra.mxu1 %v572_v15  ;;  %v470_v54 = vld [vmem:[%s841_s7] ss:$0 sm:$0xff]  ;;  %p584_p0 = scmp.ne.s32.totalorder %s441_s2, %s583_s8  ;;  %p589_p2 = scmp.lt.s32.totalorder %s583_s8, %s583_s8 }
  0x18   :  { %534 = vmatprep.subr.bf16.mxu1 %v631_v1 }
  0x19   :  { %p590_p3 = por %p589_p2, %p588_p1 }
  0x1a   :  { %515 = vmatpush3.bf16.msra.mxu0 %v567_v9 }
  0x1b   :  { %516 = vmatprep.subr.bf16.mxu0 %v631_v1  ;;  %p591_p4 = pnand %p590_p3, %p584_p0 }
  0x1e   :  { %517 = vmatpush3.bf16.msra.mxu0 %v568_v10 }
  0x21   :  { %519 = vmatmul.mubr.bf16.vlgmr.msra.gmra.mrb[0].mxu0 %v42_v13 }
  0xf4   :  { %v148_v17 = vpop.f32.mrb[0].mxu0 }
  0xf5   :  { %v149_v18 = vadd.f32 %v455_v16, %v148_v17  ;;  %v520_v19 = vpop.f32.mrb[1].mxu0 }
  0xf6   :  { %v151_v20 = vpop.f32.mrb[2].mxu0 }
  0xf7   :  { %v152_v21 = vadd.f32 %v455_v16, %v151_v20  ;;  %v521_v22 = vpop.f32.mrb[3].mxu0  ;;  %v155_v23 = vmax.f32 %v149_v18, 0.0 }
  0xf9   :  { %v156_v24 = vmax.f32 %v152_v21, 0.0 }
  0xfb   :  { %v157_v25 = vpack.c.bf16 %v156_v24, %v155_v23 }
  0xfd   :  { %531 = vmatmul.mubr.msk.bf16.vlgmr.msra.gmra.mrb[0].mxu1 %vm197_vm1, %v157_v25 }
  0xfe   :  { %538 = vmatprep.mubr.msk.bf16.mxu1 %vm632_vm0, %v631_v1  ;;  %535 = vmatpush3.bf16.msra.mxu1 %v573_v36 }
  0xff   :  { %536 = vmatprep.subr.bf16.mxu1 %v631_v1 }
 0x102   :  { %537 = vmatpush3.bf16.msra.mxu1 %v574_v38 }
 0x103   :  { %542 = vmatprep.subr.bf16.mxu1 %v631_v1 }
 0x1d0   :  { %v235_v27 = vpop.f32.mrb[0].mxu1 }
 0x1d1   :  { %v236_v28 = vadd.f32 %v464_v26, %v235_v27  ;;  %v532_v29 = vpop.f32.mrb[1].mxu1 }
 0x1d2   :  { %v238_v30 = vpop.f32.mrb[2].mxu1 }
 0x1d3   :  { %v242_v31 = vmul.f32 0.5, %v236_v28  ;;  %421 = vst [vmem:[#allocation4] sm:$0xff] %v236_v28  ;;  %v239_v32 = vadd.f32 %v464_v26, %v238_v30  ;;  %v533_v33 = vpop.f32.mrb[3].mxu1 }
 0x1d5   :  { %v244_v34 = vmul.f32 1.442695, %v242_v31  ;;  %v243_v35 = vmul.f32 0.5, %v239_v32  ;;  %422 = vst [vmem:[#allocation4 + $0x8] sm:$0xff] %v239_v32 }
 0x1d7   :  { %579 = vpow2.f32 %v244_v34  ;;  %v246_v37 = vmul.f32 1.442695, %v243_v35 }
 0x1d9   :  { %581 = vpow2.f32 %v246_v37 }
 0x1e1   :  { %v580_v39 = vpop.eup %579 }
 0x1e2   :  { %252 = vrot.lane.b32.xlu0 %v580_v39, %s633_s29 }
 0x1e3   :  { %v582_v40 = vpop.eup %581 }
 0x1e6   :  { %254 = vrot.lane.b32.xlu0 %v582_v40, %s633_s29 }
 0x254   :  { %v253_v42 = vpop.permute.xlu0 %252 }
 0x255   :  { %v258_v44 = vmul.f32 %v253_v42, %v248_v41 }
 0x257   :  { %v260_v47 = vadd.f32 %v258_v44, %v236_v28 }
 0x258   :  { %v255_v45 = vpop.permute.xlu0 %254 }
 0x259   :  { %v259_v46 = vmul.f32 %v255_v45, %v249_v43 }
 0x25b   :  { %v261_v48 = vadd.f32 %v259_v46, %v239_v32 }
 0x25d   :  { %v262_v50 = vpack.c.bf16 %v261_v48, %v260_v47 }
 0x25f   :  { %539 = vmatmul.mubr.msk.bf16.vlgmr.msra.gmra.mrb[4].mxu1 %vm286_vm2, %v262_v50 }
 0x260   :  { %543 = vmatpush3.bf16.msra.mxu1 %v575_v49  ;;  %550 = vmatprep.mubr.msk.bf16.mxu1 %vm632_vm0, %v631_v1 }
 0x261   :  { %544 = vmatprep.subr.bf16.mxu1 %v631_v1 }
 0x264   :  { %545 = vmatpush3.bf16.msra.mxu1 %v576_v51 }
 0x265   :  { %546 = vmatprep.subr.bf16.mxu1 %v631_v1 }
 0x268   :  { %547 = vmatpush3.bf16.msra.mxu1 %v577_v52 }
 0x269   :  { %548 = vmatprep.subr.bf16.mxu1 %v631_v1 }
 0x26c   :  { %549 = vmatpush3.bf16.msra.mxu1 %v578_v53 }
 0x332   :  { %v324_v55 = vpop.f32.mrb[4].mxu1 }
 0x333   :  { %v325_v56 = vadd.f32 %v470_v54, %v324_v55  ;;  %v540_v57 = vpop.f32.mrb[5].mxu1 }
 0x334   :  { %v327_v58 = vpop.f32.mrb[6].mxu1 }
 0x335   :  { %v328_v59 = vadd.f32 %v470_v54, %v327_v58  ;;  %v541_v60 = vpop.f32.mrb[7].mxu1  ;;  %v331_v61 = vmax.f32 %v325_v56, 0.0 }
 0x337   :  { %v332_v62 = vmax.f32 %v328_v59, 0.0 }
 0x339   :  { %v333_v63 = vpack.c.bf16 %v332_v62, %v331_v61 }
 0x33b   :  { %551 = vmatmul.mubr.msk.bf16.vlgmr.msra.gmra.mrb[8].mxu1 %vm197_vm1, %v333_v63 }
 0x33c   :  { %594 = shalt.err (!%p591_p4)
}
 0x33d   :  { %s595_s0 = scalar_lea.hbm %s845_s11, 256 }
 0x33e   :  { %p596_p5 = scmp.ne.s32.totalorder %s845_s11, %s595_s0  ;;  %p599_p6 = scmp.lt.u32.totalorder %s595_s0, %s845_s11 }
 0x340   :  { %p601_p7 = pnand %p599_p6, %p596_p5 }
 0x342   :  { %604 = shalt.err (!%p601_p7)
}
 0x343   :  { %s635_s27 = smov 128   ;;  %s636_s5 = smov 8   ;;  %v474_v0 = vld [vmem:[%s843_s9] ss:$0 sm:$0xff] }
 0x344   :  { %446 = dma.vmem_to_hbm [thread:$0]  %s441_s2, 256, %s845_s11, [#allocation5], %s635_s27, %s635_s27, %s636_s5  }
 0x345   :  { %s637_s13 = smov [#allocation2]  }
 0x346   :  { %s428_s14 = sshll.u32 %s637_s13, 4  ;;  %s429_s14 = int_to_ptr.vmem [resolvable:$true] %s428_s14 }
 0x347   :  { %s605_s6 = scalar_lea.vmem %s429_s14, 256  ;;  %p610_p9 = scmp.lt.s32.totalorder %s429_s14, %s429_s14 }
 0x348   :  { %p606_p8 = scmp.ne.s32.totalorder %s429_s14, %s605_s6  ;;  %p611_p10 = scmp.lt.s32.totalorder %s605_s6, %s605_s6 }
 0x34a   :  { %p612_p11 = por %p611_p10, %p610_p9 }
 0x34c   :  { %p613_p12 = pnand %p612_p11, %p606_p8 }
 0x40e   :  { %v410_v1 = vpop.f32.mrb[8].mxu1 }
 0x40f   :  { %v411_v2 = vadd.f32 %v474_v0, %v410_v1  ;;  %v552_v3 = vpop.f32.mrb[9].mxu1 }
 0x410   :  { %v413_v4 = vpop.f32.mrb[10].mxu1 }
 0x411   :  { %v417_v5 = vmax.f32 %v411_v2, 0.0  ;;  %v414_v6 = vadd.f32 %v474_v0, %v413_v4  ;;  %v553_v7 = vpop.f32.mrb[11].mxu1 }
 0x413   :  { %419 = vst [vmem:[#allocation2] sm:$0xff] %v417_v5  ;;  %v418_v8 = vmax.f32 %v414_v6, 0.0 }
 0x415   :  { %420 = vst [vmem:[#allocation2 + $0x8] sm:$0xff] %v418_v8 }
 0x416   :  { %616 = shalt.err (!%p613_p12)
}
 0x417   :  { %s617_s15 = scalar_lea.hbm %s844_s10, 256 }
 0x418   :  { %p618_p13 = scmp.ne.s32.totalorder %s844_s10, %s617_s15  ;;  %p621_p0 = scmp.lt.u32.totalorder %s617_s15, %s844_s10 }
 0x41a   :  { %p623_p1 = pnand %p621_p0, %p618_p13 }
 0x41c   :  { %626 = shalt.err (!%p623_p1)
}
 0x41d   :  { %434 = dma.vmem_to_hbm [thread:$0]  %s429_s14, 256, %s844_s10, [#allocation3], %s635_s27, %s635_s27, %s636_s5  }
 0x41e   :  { %627 = dma.done.wait [#allocation3], 256  }
 0x41f   :  { %628 = vsyncadd [#allocation3], 4294967040 }
 0x420   :  { %629 = dma.done.wait [#allocation5], 256  }
 0x421   :  { %630 = vsyncadd [#allocation5], 4294967040 }
 0x422   :  { %453 = vsyncpa [#allocation3], 1 }
 0x423   :  { %454 = vsyncpa [#allocation5], 1 }

</bundles_post_ra>
